<compile_context>
chip_gen: v7x
topology: tpu7x:2x2x1
jax: 0.10.0
libtpu: 0.0.40
codegen_flags: <defaults>
</compile_context>

<pallas_src>
import functools

import jax
import jax.numpy as jnp
from jax.experimental import pallas as pl
from jax.experimental.pallas import tpu as pltpu


def _round_up(v, m):
    return ((v + m - 1) // m) * m


def _mlp_kernel(x_ref, w1_ref, b1_ref, w2_ref, b2_ref, w3_ref, b3_ref, o_ref):
    cdt = w1_ref.dtype  # compute dtype (bf16 fast path, f32 exact-ish path)
    # lin_in + relu  (dropout is identity in eval mode). x is cast in-kernel so
    # the wrapper does not launch a separate convert kernel.
    h = jnp.dot(x_ref[...].astype(cdt), w1_ref[...],
                preferred_element_type=jnp.float32)
    h = jnp.maximum(h + b1_ref[...], 0.0)          # implicit (1,F) broadcast on the VPU
    # hidden linear + relu. h2 is lane-padded to a multiple of 128 in the
    # wrapper, so this intermediate is lane-dense (no masked partial-lane ops).
    h = jnp.dot(h.astype(cdt), w2_ref[...], preferred_element_type=jnp.float32)
    h = jnp.maximum(h + b2_ref[...], 0.0)
    # lin_out (no activation). Output kept at its true width: masked stores of
    # a narrow output beat an 8x-padded HBM write + extra slice kernel.
    out = jnp.dot(h.astype(cdt), w3_ref[...], preferred_element_type=jnp.float32)
    o_ref[...] = (out + b3_ref[...]).astype(o_ref.dtype)


def prepare_mlp_params(w1, b1, w2, b2, w3, b3, *, use_bf16=True):
    """One-time parameter prep (outside the hot forward): pad h2 to 128 lanes
    and cast weights to the compute dtype. Biases stay f32 (added post-acc)."""
    h2 = w2.shape[1]
    h2_pad = _round_up(h2, 128)
    w2p = jnp.pad(w2, ((0, 0), (0, h2_pad - h2)))          # pad fan_out cols
    b2p = jnp.pad(b2, ((0, 0), (0, h2_pad - h2)))
    w3p = jnp.pad(w3, ((0, h2_pad - h2), (0, 0)))          # pad fan_in rows
    cdt = jnp.bfloat16 if use_bf16 else jnp.float32
    return (w1.astype(cdt), b1.astype(jnp.float32),
            w2p.astype(cdt), b2p.astype(jnp.float32),
            w3p.astype(cdt), b3.astype(jnp.float32))


@functools.partial(jax.jit, static_argnames=("tile_n",))
def mlp_forward(x, w1, b1, w2, b2, w3, b3, *, tile_n=2048):
    n, in_nodes = x.shape
    h1 = w1.shape[1]
    h2_pad = w2.shape[1]
    out_nodes = w3.shape[1]

    # Row tile: target ~2 grid steps (fills both v7x TensorCores; on single-TC
    # v5e/v6e the one extra step costs ~0.35us, negligible vs. halving nothing).
    # Multiple of 8 (f32 sublane), clamped to the batch, capped at tile_n so
    # very large batches still pipeline within VMEM.
    tile = max(8, _round_up(pl.cdiv(n, 2), 8))
    tile = min(tile, tile_n, _round_up(n, 8))
    grid = (pl.cdiv(n, tile),)

    bpe = jnp.dtype(w1.dtype).itemsize
    weight_elems = in_nodes * h1 + h1 * h2_pad + h2_pad * out_nodes
    cost = pl.CostEstimate(
        flops=2 * n * weight_elems,
        transcendentals=0,
        bytes_accessed=(n * in_nodes * 4                   # x stream (f32)
                        + n * out_nodes * 4                # output stream (unpadded)
                        + weight_elems * bpe               # weights (resident)
                        + (h1 + 2 * h2_pad + out_nodes) * 4),  # biases
    )

    def row_map(i):
        return (i, 0)

    def full_map(i):
        # Constant block index -> weights/biases stay resident in VMEM across
        # all grid steps (no per-step re-fetch).
        return (0, 0)

    return pl.pallas_call(
        _mlp_kernel,
        out_shape=jax.ShapeDtypeStruct((n, out_nodes), jnp.float32),
        grid_spec=pltpu.PrefetchScalarGridSpec(
            num_scalar_prefetch=0,
            grid=grid,
            in_specs=[
                pl.BlockSpec((tile, in_nodes), row_map),   # x tile (double-buffered)
                pl.BlockSpec(w1.shape, full_map),          # W1 (in, h1)
                pl.BlockSpec(b1.shape, full_map),          # b1 (1, h1)
                pl.BlockSpec(w2.shape, full_map),          # W2 (h1, h2_pad)
                pl.BlockSpec(b2.shape, full_map),          # b2 (1, h2_pad)
                pl.BlockSpec(w3.shape, full_map),          # W3 (h2_pad, out)
                pl.BlockSpec(b3.shape, full_map),          # b3 (1, out)
            ],
            out_specs=pl.BlockSpec((tile, out_nodes), row_map),
        ),
        compiler_params=pltpu.CompilerParams(
            dimension_semantics=("parallel",),
        ),
        cost_estimate=cost,
    )(x, w1, b1, w2, b2, w3, b3)


def _init_linear(key, fan_in, fan_out):
    # Deterministic PyTorch-style Kaiming-uniform init: U(-1/sqrt(fan_in), 1/sqrt(fan_in)).
    kw, kb = jax.random.split(key)
    bound = 1.0 / jnp.sqrt(float(fan_in))
    w = jax.random.uniform(kw, (fan_in, fan_out), jnp.float32, -bound, bound)
    b = jax.random.uniform(kb, (1, fan_out), jnp.float32, -bound, bound)
    return w, b


def _reference(x, w1, b1, w2, b2, w3, b3):
    h = jnp.maximum(x @ w1 + b1, 0.0)
    h = jnp.maximum(h @ w2 + b2, 0.0)
    return h @ w3 + b3


if __name__ == "__main__":
    # Module config: MLP(in_nodes=64, out_nodes=16, hidden=[256, 32]), eval mode.
    in_nodes, out_nodes = 64, 16
    hidden = [256, 32]
    batch = 512  # 2 grid steps of 256 rows each with the default tile heuristic

    key = jax.random.PRNGKey(0)
    kx, k1, k2, k3 = jax.random.split(key, 4)

    x = jax.random.normal(kx, (batch, in_nodes), jnp.float32)
    w1, b1 = _init_linear(k1, in_nodes, hidden[0])
    w2, b2 = _init_linear(k2, hidden[0], hidden[1])
    w3, b3 = _init_linear(k3, hidden[1], out_nodes)

    ref = _reference(x, w1, b1, w2, b2, w3, b3)

    # f32 path (default MXU precision; matches PyTorch eval forward to ~1e-4).
    params_f32 = prepare_mlp_params(w1, b1, w2, b2, w3, b3, use_bf16=False)
    out_f32 = jax.block_until_ready(mlp_forward(x, *params_f32))
    assert out_f32.shape == (batch, out_nodes)
    assert jnp.allclose(out_f32, ref, atol=1e-4, rtol=1e-4), "f32 path mismatch vs reference"

    # Fast path: bf16 weights on the MXU, f32 accumulation, x cast in-kernel.
    params_bf16 = prepare_mlp_params(w1, b1, w2, b2, w3, b3, use_bf16=True)
    out_fast = jax.block_until_ready(mlp_forward(x, *params_bf16))
    assert out_fast.shape == (batch, out_nodes)
    max_err = float(jnp.max(jnp.abs(out_fast - ref)))
    assert max_err < 5e-2, f"bf16 path mismatch vs reference (max abs err {max_err})"

    print("KERNEL_OK")
</pallas_src>

<mosaic_0001>
module attributes {stable_mosaic.version = 11 : i64} {
  func.func @_mlp_kernel(%arg0: i32, %arg1: memref<256x64xf32, #tpu.memory_space<vmem>>, %arg2: memref<64x256xf32, #tpu.memory_space<vmem>>, %arg3: memref<1x256xf32, #tpu.memory_space<vmem>>, %arg4: memref<256x128xf32, #tpu.memory_space<vmem>>, %arg5: memref<1x128xf32, #tpu.memory_space<vmem>>, %arg6: memref<128x16xf32, #tpu.memory_space<vmem>>, %arg7: memref<1x16xf32, #tpu.memory_space<vmem>>, %arg8: memref<256x16xf32, #tpu.memory_space<vmem>>) attributes {dimension_semantics = [#tpu.dimension_semantics<parallel>], iteration_bounds = array<i64: 2>, scalar_prefetch = 0 : i64, scratch_operands = 0 : i64, tpu.core_type = #tpu.core_type<tc>, window_params = [{transform_indices = @transform_0, window_bounds = array<i64: 256, 64>}, {pipeline_mode = #tpu.pipeline_mode<synchronous>, transform_indices = @transform_1, window_bounds = array<i64: 64, 256>}, {pipeline_mode = #tpu.pipeline_mode<synchronous>, transform_indices = @transform_2, window_bounds = array<i64: 1, 256>}, {pipeline_mode = #tpu.pipeline_mode<synchronous>, transform_indices = @transform_3, window_bounds = array<i64: 256, 128>}, {pipeline_mode = #tpu.pipeline_mode<synchronous>, transform_indices = @transform_4, window_bounds = array<i64: 1, 128>}, {pipeline_mode = #tpu.pipeline_mode<synchronous>, transform_indices = @transform_5, window_bounds = array<i64: 128, 16>}, {pipeline_mode = #tpu.pipeline_mode<synchronous>, transform_indices = @transform_6, window_bounds = array<i64: 1, 16>}, {transform_indices = @transform_7, window_bounds = array<i64: 256, 16>}]} {
    %c0 = arith.constant 0 : index
    %c0_0 = arith.constant 0 : index
    %0 = vector.load %arg1[%c0, %c0_0] : memref<256x64xf32, #tpu.memory_space<vmem>>, vector<256x64xf32>
    %c0_1 = arith.constant 0 : index
    %c0_2 = arith.constant 0 : index
    %1 = vector.load %arg2[%c0_1, %c0_2] : memref<64x256xf32, #tpu.memory_space<vmem>>, vector<64x256xf32>
    %cst = arith.constant dense<0.000000e+00> : vector<256x256xf32>
    %2 = tpu.matmul %0, %1, %cst {dimension_numbers = #tpu.dot_dimension_numbers<[1], [0], [0], [1], [0, 0, 1, 1], [], []>} : vector<256x64xf32>, vector<64x256xf32>, vector<256x256xf32> -> vector<256x256xf32>
    %c0_3 = arith.constant 0 : index
    %c0_4 = arith.constant 0 : index
    %3 = vector.load %arg3[%c0_3, %c0_4] : memref<1x256xf32, #tpu.memory_space<vmem>>, vector<1x256xf32>
    %4 = vector.broadcast %3 : vector<1x256xf32> to vector<256x256xf32>
    %5 = arith.addf %2, %4 : vector<256x256xf32>
    %cst_5 = arith.constant 0.000000e+00 : f32
    %6 = vector.broadcast %cst_5 : f32 to vector<256x256xf32>
    %7 = arith.maximumf %5, %6 : vector<256x256xf32>
    %c0_6 = arith.constant 0 : index
    %c0_7 = arith.constant 0 : index
    %8 = vector.load %arg4[%c0_6, %c0_7] : memref<256x128xf32, #tpu.memory_space<vmem>>, vector<256x128xf32>
    %cst_8 = arith.constant dense<0.000000e+00> : vector<256x128xf32>
    %9 = tpu.matmul %7, %8, %cst_8 {dimension_numbers = #tpu.dot_dimension_numbers<[1], [0], [0], [1], [0, 0, 1, 1], [], []>} : vector<256x256xf32>, vector<256x128xf32>, vector<256x128xf32> -> vector<256x128xf32>
    %c0_9 = arith.constant 0 : index
    %c0_10 = arith.constant 0 : index
    %10 = vector.load %arg5[%c0_9, %c0_10] : memref<1x128xf32, #tpu.memory_space<vmem>>, vector<1x128xf32>
    %11 = vector.broadcast %10 : vector<1x128xf32> to vector<256x128xf32>
    %12 = arith.addf %9, %11 : vector<256x128xf32>
    %cst_11 = arith.constant 0.000000e+00 : f32
    %13 = vector.broadcast %cst_11 : f32 to vector<256x128xf32>
    %14 = arith.maximumf %12, %13 : vector<256x128xf32>
    %c0_12 = arith.constant 0 : index
    %c0_13 = arith.constant 0 : index
    %15 = vector.load %arg6[%c0_12, %c0_13] : memref<128x16xf32, #tpu.memory_space<vmem>>, vector<128x16xf32>
    %cst_14 = arith.constant dense<0.000000e+00> : vector<256x16xf32>
    %16 = tpu.matmul %14, %15, %cst_14 {dimension_numbers = #tpu.dot_dimension_numbers<[1], [0], [0], [1], [0, 0, 1, 1], [], []>} : vector<256x128xf32>, vector<128x16xf32>, vector<256x16xf32> -> vector<256x16xf32>
    %c0_15 = arith.constant 0 : index
    %c0_16 = arith.constant 0 : index
    %17 = vector.load %arg7[%c0_15, %c0_16] : memref<1x16xf32, #tpu.memory_space<vmem>>, vector<1x16xf32>
    %18 = vector.broadcast %17 : vector<1x16xf32> to vector<256x16xf32>
    %19 = arith.addf %16, %18 : vector<256x16xf32>
    %c0_17 = arith.constant 0 : index
    %c0_18 = arith.constant 0 : index
    %20 = vector.load %arg8[%c0_17, %c0_18] : memref<256x16xf32, #tpu.memory_space<vmem>>, vector<256x16xf32>
    tpu.vector_store %arg8[%c0_17, %c0_18], %19 {strides = array<i32>} : memref<256x16xf32, #tpu.memory_space<vmem>>, vector<256x16xf32>,
    return
  }
  func.func @transform_0(%arg0: i32) -> (i32, i32) {
    %c0_i32 = arith.constant 0 : i32
    %c0_i32_0 = arith.constant 0 : i32
    return %arg0, %c0_i32 : i32, i32
  }
  func.func @transform_1(%arg0: i32) -> (i32, i32) {
    %c0_i32 = arith.constant 0 : i32
    %c0_i32_0 = arith.constant 0 : i32
    %c0_i32_1 = arith.constant 0 : i32
    return %c0_i32, %c0_i32_0 : i32, i32
  }
  func.func @transform_2(%arg0: i32) -> (i32, i32) {
    %c0_i32 = arith.constant 0 : i32
    %c0_i32_0 = arith.constant 0 : i32
    %c0_i32_1 = arith.constant 0 : i32
    return %c0_i32, %c0_i32_0 : i32, i32
  }
  func.func @transform_3(%arg0: i32) -> (i32, i32) {
    %c0_i32 = arith.constant 0 : i32
    %c0_i32_0 = arith.constant 0 : i32
    %c0_i32_1 = arith.constant 0 : i32
    return %c0_i32, %c0_i32_0 : i32, i32
  }
  func.func @transform_4(%arg0: i32) -> (i32, i32) {
    %c0_i32 = arith.constant 0 : i32
    %c0_i32_0 = arith.constant 0 : i32
    %c0_i32_1 = arith.constant 0 : i32
    return %c0_i32, %c0_i32_0 : i32, i32
  }
  func.func @transform_5(%arg0: i32) -> (i32, i32) {
    %c0_i32 = arith.constant 0 : i32
    %c0_i32_0 = arith.constant 0 : i32
    %c0_i32_1 = arith.constant 0 : i32
    return %c0_i32, %c0_i32_0 : i32, i32
  }
  func.func @transform_6(%arg0: i32) -> (i32, i32) {
    %c0_i32 = arith.constant 0 : i32
    %c0_i32_0 = arith.constant 0 : i32
    %c0_i32_1 = arith.constant 0 : i32
    return %c0_i32, %c0_i32_0 : i32, i32
  }
  func.func @transform_7(%arg0: i32) -> (i32, i32) {
    %c0_i32 = arith.constant 0 : i32
    %c0_i32_0 = arith.constant 0 : i32
    return %arg0, %c0_i32 : i32, i32
  }
}

</mosaic_0001>

<bundles_post_ra>
// kernel: mlp_forward.1
= control target key start
LH: loop header
LB: loop body
LE: loop exit
PB: predicated region body
PF: predicated region fallthrough
CT: control target
= control target key end

     0   :  { %s1738_s24 = smov 0   ;;  %s2279_s0 = inlined_call_operand.vmem [shape: f32[512,64], index: 0, kind: input, shape index: {}]   ;;  %s2280_s1 = inlined_call_operand.vmem [shape: f32[64,256], index: 1, kind: input, shape index: {}]   ;;  %s2281_s2 = inlined_call_operand.vmem [shape: f32[1,256], index: 2, kind: input, shape index: {}]   ;;  %s2282_s3 = inlined_call_operand.vmem [shape: f32[256,128], index: 3, kind: input, shape index: {}]   ;;  %s2283_s4 = inlined_call_operand.vmem [shape: f32[1,128], index: 4, kind: input, shape index: {}]   ;;  %s2284_s5 = inlined_call_operand.vmem [shape: f32[128,16], index: 5, kind: input, shape index: {}]   ;;  %s2285_s6 = inlined_call_operand.vmem [shape: f32[1,16], index: 6, kind: input, shape index: {}]   ;;  %s2286_s7 = inlined_call_operand.vmem [shape: f32[512,16], index: 7, kind: output, shape index: {}]  }
   0x1 LB: > { %s1393_s25 = sadd.s32 4294967295, %s1694_s24   ;;  %p1397_p0 = scmp.ge.s32.totalorder %s1694_s24, 1  ;;  %s1694_s24 = sphi %s1738_s24, %s17_s24  }
   0x2   : > { %p238_p1 = scmp.lt.s32.totalorder %s1694_s24, 3 }
   0x4   : > { %p239_p2 = pnand %p1397_p0, %p238_p1 }
   0x5   : > { %v315_v0 = vld [vmem:[%s2280_s1 + $0x8] sm:$0xff] (!%p239_p2)  ;;  %v317_v1 = vld [vmem:[%s2280_s1 + $0x18] sm:$0xff] (!%p239_p2)  ;;  %v314_v2 = vld [vmem:[%s2280_s1] sm:$0xff] (!%p239_p2)  ;;  %s1398_s9 = sshll.u32 (!%p239_p2), %s1393_s25, 5  ;;  %v1696_v7 = vmov (!%p239_p2), 0.0   ;;  %vm342_vm0 = vcmask (!%p239_p2), 523264  }
   0x6   : > { %242 = sbr.rel (%p239_p2) target bundleno = 798 (0x31e), region = 48  ;;  %v1566_v3 = vpack.c.bf16 (!%p239_p2), %v317_v1, %v315_v0  ;;  %v316_v4 = vld [vmem:[%s2280_s1 + $0x10] sm:$0xff] (!%p239_p2)  ;;  %v319_v5 = vld [vmem:[%s2280_s1 + $0x28] sm:$0xff] (!%p239_p2)  ;;  %v321_v6 = vld [vmem:[%s2280_s1 + $0x38] sm:$0xff] (!%p239_p2)  ;;  %503 = vmatprep.mubr.f32.mxu0 (!%p239_p2), %v1696_v7  ;;  %p271_p3 = scmp.lt.s32.totalorder (!%p239_p2), %s1398_s9, 63  ;;  %v1697_v26 = vmov (!%p239_p2), 0.0|0.0  }
   0x7   : > { %v1568_v8 = vpack.c.bf16 (!%p239_p2), %v316_v4, %v314_v2  ;;  %v1570_v9 = vpack.c.bf16 (!%p239_p2), %v321_v6, %v319_v5  ;;  %v318_v10 = vld [vmem:[%s2280_s1 + $0x20] sm:$0xff] (!%p239_p2)  ;;  %v320_v11 = vld [vmem:[%s2280_s1 + $0x30] sm:$0xff] (!%p239_p2)  ;;  %v323_v12 = vld [vmem:[%s2280_s1 + $0x48] sm:$0xff] (!%p239_p2)  ;;  %1582 = vmatprep.subr.bf16.mxu1 (!%p239_p2), %v1697_v26  ;;  %vm1304_vm1 = vcmask (!%p239_p2), 130048  }
   0x8   : > { %1567 = vmatprep.subr.bf16.mxu0 (!%p239_p2), %v1566_v3  ;;  %v325_v13 = vld [vmem:[%s2280_s1 + $0x58] sm:$0xff] (!%p239_p2)  ;;  %v1572_v14 = vpack.c.bf16 (!%p239_p2), %v320_v11, %v318_v10  ;;  %v322_v16 = vld [vmem:[%s2280_s1 + $0x40] sm:$0xff] (!%p239_p2)  ;;  %v324_v17 = vld [vmem:[%s2280_s1 + $0x50] sm:$0xff] (!%p239_p2) }
   0x9   : > { %1569 = vmatpush1.bf16.msra.mxu0 (!%p239_p2), %v1568_v8  ;;  %v1574_v15 = vpack.c.bf16 (!%p239_p2), %v325_v13, %v323_v12  ;;  %v327_v18 = vld [vmem:[%s2280_s1 + $0x68] sm:$0xff] (!%p239_p2)  ;;  %v329_v19 = vld [vmem:[%s2280_s1 + $0x78] sm:$0xff] (!%p239_p2)  ;;  %v1576_v20 = vpack.c.bf16 (!%p239_p2), %v324_v17, %v322_v16  ;;  %v326_v22 = vld [vmem:[%s2280_s1 + $0x60] sm:$0xff] (!%p239_p2) }
   0xa   : > { %1571 = vmatprep.subr.bf16.mxu0 (!%p239_p2), %v1570_v9  ;;  %v1578_v21 = vpack.c.bf16 (!%p239_p2), %v329_v19, %v327_v18  ;;  %v328_v23 = vld [vmem:[%s2280_s1 + $0x70] sm:$0xff] (!%p239_p2)  ;;  %v760_v27 = vld [vmem:[%s2282_s3] sm:$0xff] (!%p239_p2)  ;;  %v761_v28 = vld [vmem:[%s2282_s3 + $0x8] sm:$0xff] (!%p239_p2) }
   0xb   : > { %v1580_v24 = vpack.c.bf16 (!%p239_p2), %v328_v23, %v326_v22  ;;  %v762_v29 = vld [vmem:[%s2282_s3 + $0x10] sm:$0xff] (!%p239_p2)  ;;  %v763_v30 = vld [vmem:[%s2282_s3 + $0x18] sm:$0xff] (!%p239_p2)  ;;  %v1583_v31 = vpack.c.bf16 (!%p239_p2), %v761_v28, %v760_v27  ;;  %v764_v34 = vld [vmem:[%s2282_s3 + $0x20] sm:$0xff] (!%p239_p2) }
   0xc   : > { %v1586_v33 = vpack.c.bf16 (!%p239_p2), %v763_v30, %v762_v29  ;;  %v765_v35 = vld [vmem:[%s2282_s3 + $0x28] sm:$0xff] (!%p239_p2)  ;;  %v766_v38 = vld [vmem:[%s2282_s3 + $0x30] sm:$0xff] (!%p239_p2)  ;;  %v767_v39 = vld [vmem:[%s2282_s3 + $0x38] sm:$0xff] (!%p239_p2) }
   0xd   : > { %s2288_s9 = smov (!%p271_p3, %s1398_s9), 63  ;;  %1573 = vmatpush1.bf16.msra.mxu0 %v1572_v14  ;;  %1584 = vmatpush1.bf16.msra.mxu1 %v1583_v31  ;;  %v1589_v37 = vpack.c.bf16 %v765_v35, %v764_v34  ;;  %v1592_v41 = vpack.c.bf16 %v767_v39, %v766_v38  ;;  %v768_v42 = vld [vmem:[%s2282_s3 + $0x40] sm:$0xff]  ;;  %v769_v43 = vld [vmem:[%s2282_s3 + $0x48] sm:$0xff]  ;;  %v770_v46 = vld [vmem:[%s2282_s3 + $0x50] sm:$0xff] }
   0xe   : > { %1575 = vmatprep.subr.bf16.mxu0 %v1574_v15  ;;  %s1399_s15 = sshll.u32 %s2288_s9, 3  ;;  %1585 = vmatprep.subr.bf16.mxu1 %v1697_v26  ;;  %v1595_v45 = vpack.c.bf16 %v769_v43, %v768_v42  ;;  %v771_v47 = vld [vmem:[%s2282_s3 + $0x58] sm:$0xff]  ;;  %v772_v50 = vld [vmem:[%s2282_s3 + $0x60] sm:$0xff]  ;;  %v773_v51 = vld [vmem:[%s2282_s3 + $0x68] sm:$0xff]  ;;  %v332_v43 = vlaneseq }
   0xf   : > { %s1803_s18 = scalar_lea.vmem %s2279_s0, %s1399_s15  ;;  %v1598_v49 = vpack.c.bf16 %v771_v47, %v770_v46  ;;  %v1601_v53 = vpack.c.bf16 %v773_v51, %v772_v50  ;;  %v774_v54 = vld [vmem:[%s2282_s3 + $0x70] sm:$0xff]  ;;  %v775_v55 = vld [vmem:[%s2282_s3 + $0x78] sm:$0xff]  ;;  %v776_v58 = vld [vmem:[%s2282_s3 + $0x80] sm:$0xff]  ;;  %s2178_s27 = scalar_lea.vmem %s2286_s7, %s1399_s15 }
  0x10   : > { %v282_v25 = vld [vmem:[%s1803_s18] sm:$0xff]  ;;  %v283_v32 = vld [vmem:[%s1803_s18 + $0x8] sm:$0xff]  ;;  %v284_v36 = vld [vmem:[%s1803_s18 + $0x10] sm:$0xff]  ;;  %v1604_v57 = vpack.c.bf16 %v775_v55, %v774_v54 }
  0x11   : > { %1577 = vmatpush1.bf16.msra.mxu0 %v1576_v20  ;;  %1587 = vmatpush1.bf16.msra.mxu1 %v1586_v33  ;;  %v285_v40 = vld [vmem:[%s1803_s18 + $0x18] sm:$0xff]  ;;  %v286_v44 = vld [vmem:[%s1803_s18 + $0x20] sm:$0xff]  ;;  %v287_v48 = vld [vmem:[%s1803_s18 + $0x28] sm:$0xff] }
  0x12   : > { %1579 = vmatprep.subr.bf16.mxu0 %v1578_v21  ;;  %1588 = vmatprep.subr.bf16.mxu1 %v1697_v26  ;;  %v288_v52 = vld [vmem:[%s1803_s18 + $0x30] sm:$0xff]  ;;  %v289_v56 = vld [vmem:[%s1803_s18 + $0x38] sm:$0xff]  ;;  %v777_v59 = vld [vmem:[%s2282_s3 + $0x88] sm:$0xff] }
  0x13   : > { %v290_v60 = vld [vmem:[%s1803_s18 + $0x40] sm:$0xff]  ;;  %v1607_v61 = vpack.c.bf16 %v777_v59, %v776_v58  ;;  %v778_v62 = vld [vmem:[%s2282_s3 + $0x90] sm:$0xff]  ;;  %v779_v63 = vld [vmem:[%s2282_s3 + $0x98] sm:$0xff] }
  0x14   : > { %v291_v0 = vld [vmem:[%s1803_s18 + $0x48] sm:$0xff]  ;;  %v1610_v1 = vpack.c.bf16 %v779_v63, %v778_v62  ;;  %v780_v2 = vld [vmem:[%s2282_s3 + $0xa0] sm:$0xff]  ;;  %v292_v4 = vld [vmem:[%s1803_s18 + $0x50] sm:$0xff] }
  0x15   : > { %1581 = vmatpush1.bf16.msra.mxu0 %v1580_v24  ;;  %1590 = vmatpush1.bf16.msra.mxu1 %v1589_v37  ;;  %v781_v3 = vld [vmem:[%s2282_s3 + $0xa8] sm:$0xff]  ;;  %v782_v6 = vld [vmem:[%s2282_s3 + $0xb0] sm:$0xff]  ;;  %v783_v8 = vld [vmem:[%s2282_s3 + $0xb8] sm:$0xff] }
  0x16   : > { %1591 = vmatprep.subr.bf16.mxu1 %v1697_v26  ;;  %v1613_v5 = vpack.c.bf16 %v781_v3, %v780_v2  ;;  %v293_v9 = vld [vmem:[%s1803_s18 + $0x58] sm:$0xff]  ;;  %v1616_v10 = vpack.c.bf16 %v783_v8, %v782_v6  ;;  %v784_v11 = vld [vmem:[%s2282_s3 + $0xc0] sm:$0xff]  ;;  %v785_v12 = vld [vmem:[%s2282_s3 + $0xc8] sm:$0xff] }
  0x17   : > { %v294_v13 = vld [vmem:[%s1803_s18 + $0x60] sm:$0xff]  ;;  %v1619_v14 = vpack.c.bf16 %v785_v12, %v784_v11  ;;  %v786_v15 = vld [vmem:[%s2282_s3 + $0xd0] sm:$0xff]  ;;  %v787_v16 = vld [vmem:[%s2282_s3 + $0xd8] sm:$0xff] }
  0x18   : > { %1402 = vmatmul.mubr.msk.f32.vlgmr.msra.gmra.mrb[0].mxu0 %vm342_vm0, %v282_v25  ;;  %v295_v17 = vld [vmem:[%s1803_s18 + $0x68] sm:$0xff]  ;;  %v1622_v18 = vpack.c.bf16 %v787_v16, %v786_v15  ;;  %v296_v19 = vld [vmem:[%s1803_s18 + $0x70] sm:$0xff]  ;;  %v297_v20 = vld [vmem:[%s1803_s18 + $0x78] sm:$0xff] }
  0x19   : > { %509 = vmatprep.mubr.f32.mxu0 %v1696_v7  ;;  %1593 = vmatpush1.bf16.msra.mxu1 %v1592_v41  ;;  %v298_v21 = vld [vmem:[%s1803_s18 + $0x80] sm:$0xff]  ;;  %v299_v22 = vld [vmem:[%s1803_s18 + $0x88] sm:$0xff]  ;;  %v300_v23 = vld [vmem:[%s1803_s18 + $0x90] sm:$0xff] }
  0x1a   : > { %1594 = vmatprep.subr.bf16.mxu1 %v1697_v26  ;;  %v301_v24 = vld [vmem:[%s1803_s18 + $0x98] sm:$0xff]  ;;  %v302_v25 = vld [vmem:[%s1803_s18 + $0xa0] sm:$0xff]  ;;  %v789_v28 = vld [vmem:[%s2282_s3 + $0xe8] sm:$0xff] }
  0x1b   : > { %v788_v27 = vld [vmem:[%s2282_s3 + $0xe0] sm:$0xff]  ;;  %v303_v29 = vld [vmem:[%s1803_s18 + $0xa8] sm:$0xff]  ;;  %v790_v31 = vld [vmem:[%s2282_s3 + $0xf0] sm:$0xff] }
  0x1c   : > { %1403 = vmatmul.mubr.msk.f32.gmra.mrb[2].mxu0 %vm342_vm0, %v283_v32  ;;  %v1625_v30 = vpack.c.bf16 %v789_v28, %v788_v27  ;;  %v791_v32 = vld [vmem:[%s2282_s3 + $0xf8] sm:$0xff]  ;;  %v304_v33 = vld [vmem:[%s1803_s18 + $0xb0] sm:$0xff]  ;;  %v306_v35 = vld [vmem:[%s1803_s18 + $0xc0] sm:$0xff] }
  0x1d   : > { %515 = vmatprep.mubr.f32.mxu0 %v1696_v7  ;;  %1596 = vmatpush1.bf16.msra.mxu1 %v1595_v45  ;;  %v1628_v34 = vpack.c.bf16 %v791_v32, %v790_v31  ;;  %v308_v37 = vld [vmem:[%s1803_s18 + $0xd0] sm:$0xff]  ;;  %v309_v38 = vld [vmem:[%s1803_s18 + $0xd8] sm:$0xff]  ;;  %v310_v39 = vld [vmem:[%s1803_s18 + $0xe0] sm:$0xff] }
  0x1e   : > { %1597 = vmatprep.subr.bf16.mxu1 %v1697_v26  ;;  %v312_v41 = vld [vmem:[%s1803_s18 + $0xf0] sm:$0xff]  ;;  %v313_v42 = vld [vmem:[%s1803_s18 + $0xf8] sm:$0xff]  ;;  %v330_v46 = vld [vmem:[%s2281_s2] sm:$0x3] }
  0x1f   : > { %v1057_v54 = vld [vmem:[%s2284_s5 + $0x8] sm:$0xff]  ;;  %v1058_v55 = vld [vmem:[%s2284_s5 + $0x10] sm:$0xff]  ;;  %v1059_v59 = vld [vmem:[%s2284_s5 + $0x18] sm:$0xff] }
  0x20   : > { %1404 = vmatmul.mubr.msk.f32.gmra.mrb[4].mxu0 %vm342_vm0, %v284_v36  ;;  %v307_v36 = vld [vmem:[%s1803_s18 + $0xc8] sm:$0xff]  ;;  %v1634_v63 = vpack.c.bf16 %v1059_v59, %v1058_v55  ;;  %v1063_v11 = vld [vmem:[%s2284_s5 + $0x38] sm:$0xff] }
  0x21   : > { %521 = vmatprep.mubr.f32.mxu0 %v1696_v7  ;;  %1599 = vmatpush1.bf16.msra.mxu1 %v1598_v49 }
  0x22   : > { %1600 = vmatprep.subr.bf16.mxu1 %v1697_v26 }
  0x24   : > { %1405 = vmatmul.mubr.msk.f32.gmra.mrb[6].mxu0 %vm342_vm0, %v285_v40  ;;  %v311_v40 = vld [vmem:[%s1803_s18 + $0xe8] sm:$0xff] }
  0x25   : > { %527 = vmatprep.mubr.f32.mxu0 %v1696_v7  ;;  %1602 = vmatpush1.bf16.msra.mxu1 %v1601_v53  ;;  %v1056_v53 = vld [vmem:[%s2284_s5] sm:$0xff] }
  0x26   : > { %1603 = vmatprep.subr.bf16.mxu1 %v1697_v26  ;;  %v1630_v58 = vpack.c.bf16 %v1057_v54, %v1056_v53 }
  0x28   : > { %1406 = vmatmul.mubr.msk.f32.gmra.mrb[8].mxu0 %vm342_vm0, %v286_v44  ;;  %v333_v44 = vshrl.u32 %v332_v43, 7  ;;  %1631 = vmatprep.subr.bf16.mxu0 %v1630_v58 }
  0x29   : > { %533 = vmatprep.mubr.f32.mxu0 %v1696_v7  ;;  %1605 = vmatpush1.bf16.msra.mxu1 %v1604_v57 }
  0x2a   : > { %1606 = vmatprep.subr.bf16.mxu1 %v1697_v26  ;;  %v334_v45 = vsub.s32 0, %v333_v44  ;;  %v338_v47 = vsub.s32 1, %v333_v44  ;;  %1633 = vmatpush3.bf16.msra.mxu0 %v1630_v58 }
  0x2b   : > { %1635 = vmatprep.subr.bf16.mxu0 %v1634_v63 }
  0x2c   : > { %1407 = vmatmul.mubr.msk.f32.gmra.mrb[10].mxu0 %vm342_vm0, %v287_v48  ;;  %v2015_v48 = vrot.slane %v330_v46, %v334_v45  ;;  %v2017_v49 = vrot.slane %v330_v46, %v338_v47 }
  0x2d   : > { %539 = vmatprep.mubr.f32.mxu0 %v1696_v7  ;;  %1608 = vmatpush1.bf16.msra.mxu1 %v1607_v61 }
  0x2e   : > { %1609 = vmatprep.subr.bf16.mxu1 %v1697_v26  ;;  %1637 = vmatpush3.bf16.msra.mxu0 %v1634_v63 }
  0x30   : > { %1408 = vmatmul.mubr.msk.f32.gmra.mrb[12].mxu0 %vm342_vm0, %v288_v52 }
  0x31   : > { %545 = vmatprep.mubr.f32.mxu0 %v1696_v7  ;;  %1611 = vmatpush1.bf16.msra.mxu1 %v1610_v1  ;;  %v1061_v1 = vld [vmem:[%s2284_s5 + $0x28] sm:$0xff] }
  0x32   : > { %1612 = vmatprep.subr.bf16.mxu1 %v1697_v26 }
  0x34   : > { %1409 = vmatmul.mubr.msk.f32.gmra.mrb[14].mxu0 %vm342_vm0, %v289_v56 }
  0x35   : > { %551 = vmatprep.mubr.f32.mxu0 %v1696_v7  ;;  %1614 = vmatpush1.bf16.msra.mxu1 %v1613_v5 }
  0x36   : > { %1615 = vmatprep.subr.bf16.mxu1 %v1697_v26 }
  0x38   : > { %1410 = vmatmul.mubr.msk.f32.gmra.mrb[16].mxu0 %vm342_vm0, %v290_v60 }
  0x39   : > { %557 = vmatprep.mubr.f32.mxu0 %v1696_v7  ;;  %1617 = vmatpush1.bf16.msra.mxu1 %v1616_v10  ;;  %v1062_v10 = vld [vmem:[%s2284_s5 + $0x30] sm:$0xff] }
  0x3a   : > { %1618 = vmatprep.subr.bf16.mxu1 %v1697_v26  ;;  %v1642_v15 = vpack.c.bf16 %v1063_v11, %v1062_v10 }
  0x3c   : > { %1411 = vmatmul.mubr.msk.f32.gmra.mrb[18].mxu0 %vm342_vm0, %v291_v0  ;;  %v1060_v0 = vld [vmem:[%s2284_s5 + $0x20] sm:$0xff] }
  0x3d   : > { %563 = vmatprep.mubr.f32.mxu0 %v1696_v7  ;;  %1620 = vmatpush1.bf16.msra.mxu1 %v1619_v14  ;;  %v1638_v5 = vpack.c.bf16 %v1061_v1, %v1060_v0 }
  0x3e   : > { %1621 = vmatprep.subr.bf16.mxu1 %v1697_v26 }
  0x3f   : > { %1639 = vmatprep.subr.bf16.mxu0 %v1638_v5 }
  0x40   : > { %1412 = vmatmul.mubr.msk.f32.gmra.mrb[20].mxu0 %vm342_vm0, %v292_v4 }
  0x41   : > { %569 = vmatprep.mubr.f32.mxu0 %v1696_v7  ;;  %1623 = vmatpush1.bf16.msra.mxu1 %v1622_v18 }
  0x42   : > { %1624 = vmatprep.subr.bf16.mxu1 %v1697_v26  ;;  %1641 = vmatpush3.bf16.msra.mxu0 %v1638_v5 }
  0x43   : > { %1643 = vmatprep.subr.bf16.mxu0 %v1642_v15 }
  0x44   : > { %1413 = vmatmul.mubr.msk.f32.gmra.mrb[22].mxu0 %vm342_vm0, %v293_v9 }
  0x45   : > { %575 = vmatprep.mubr.f32.mxu0 %v1696_v7  ;;  %1626 = vmatpush1.bf16.msra.mxu1 %v1625_v30  ;;  %v1067_v30 = vld [vmem:[%s2284_s5 + $0x58] sm:$0xff] }
  0x46   : > { %1627 = vmatprep.subr.bf16.mxu1 %v1697_v26  ;;  %v305_v26 = vld [vmem:[%s1803_s18 + $0xb8] sm:$0xff]  ;;  %1645 = vmatpush3.bf16.msra.mxu0 %v1642_v15 }
  0x48   : > { %1414 = vmatmul.mubr.msk.f32.gmra.mrb[24].mxu0 %vm342_vm0, %v294_v13 }
  0x49   : > { %581 = vmatprep.mubr.f32.mxu0 %v1696_v7  ;;  %1629 = vmatpush1.bf16.msra.mxu1 %v1628_v34 }
  0x4a   : > { %1662 = vmatprep.subr.bf16.mxu1 %v1630_v58 }
  0x4c   : > { %1415 = vmatmul.mubr.msk.f32.gmra.mrb[26].mxu0 %vm342_vm0, %v295_v17 }
  0x4d   : > { %587 = vmatprep.mubr.f32.mxu0 %v1696_v7 }
  0x50   : > { %1416 = vmatmul.mubr.msk.f32.gmra.mrb[28].mxu0 %vm342_vm0, %v296_v19  ;;  %v1064_v19 = vld [vmem:[%s2284_s5 + $0x40] sm:$0xff] }
  0x51   : > { %593 = vmatprep.mubr.f32.mxu0 %v1696_v7 }
  0x54   : > { %1417 = vmatmul.mubr.msk.f32.gmra.mrb[30].mxu0 %vm342_vm0, %v297_v20  ;;  %v1065_v20 = vld [vmem:[%s2284_s5 + $0x48] sm:$0xff] }
  0x55   : > { %599 = vmatprep.mubr.f32.mxu0 %v1696_v7 }
  0x58   : > { %1418 = vmatmul.mubr.msk.f32.gmra.mrb[32].mxu0 %vm342_vm0, %v298_v21 }
  0x59   : > { %605 = vmatprep.mubr.f32.mxu0 %v1696_v7 }
  0x5c   : > { %1419 = vmatmul.mubr.msk.f32.gmra.mrb[34].mxu0 %vm342_vm0, %v299_v22 }
  0x5d   : > { %611 = vmatprep.mubr.f32.mxu0 %v1696_v7 }
  0x60   : > { %1420 = vmatmul.mubr.msk.f32.gmra.mrb[36].mxu0 %vm342_vm0, %v300_v23 }
  0x61   : > { %617 = vmatprep.mubr.f32.mxu0 %v1696_v7 }
  0x64   : > { %1421 = vmatmul.mubr.msk.f32.gmra.mrb[38].mxu0 %vm342_vm0, %v301_v24  ;;  %v1646_v24 = vpack.c.bf16 %v1065_v20, %v1064_v19 }
  0x65   : > { %623 = vmatprep.mubr.f32.mxu0 %v1696_v7 }
  0x66   : > { %1647 = vmatprep.subr.bf16.mxu0 %v1646_v24 }
  0x67   : > { %1649 = vmatpush3.bf16.msra.mxu0 %v1646_v24 }
  0x68   : > { %1422 = vmatmul.mubr.msk.f32.gmra.mrb[40].mxu0 %vm342_vm0, %v302_v25 }
  0x69   : > { %629 = vmatprep.mubr.f32.mxu0 %v1696_v7 }
  0x6c   : > { %1423 = vmatmul.mubr.msk.f32.gmra.mrb[42].mxu0 %vm342_vm0, %v303_v29  ;;  %v1066_v29 = vld [vmem:[%s2284_s5 + $0x50] sm:$0xff] }
  0x6d   : > { %635 = vmatprep.mubr.f32.mxu0 %v1696_v7  ;;  %v1650_v34 = vpack.c.bf16 %v1067_v30, %v1066_v29 }
  0x6f   : > { %1651 = vmatprep.subr.bf16.mxu0 %v1650_v34 }
  0x70   : > { %1424 = vmatmul.mubr.msk.f32.gmra.mrb[44].mxu0 %vm342_vm0, %v304_v33 }
  0x71   : > { %641 = vmatprep.mubr.f32.mxu0 %v1696_v7  ;;  %1653 = vmatpush3.bf16.msra.mxu0 %v1650_v34 }
  0x74   : > { %1425 = vmatmul.mubr.msk.f32.gmra.mrb[46].mxu0 %vm342_vm0, %v305_v26 }
  0x75   : > { %647 = vmatprep.mubr.f32.mxu0 %v1696_v7 }
  0x78   : > { %1426 = vmatmul.mubr.msk.f32.gmra.mrb[48].mxu0 %vm342_vm0, %v306_v35 }
  0x79   : > { %653 = vmatprep.mubr.f32.mxu0 %v1696_v7 }
  0x7c   : > { %1427 = vmatmul.mubr.msk.f32.gmra.mrb[50].mxu0 %vm342_vm0, %v307_v36 }
  0x7d   : > { %659 = vmatprep.mubr.f32.mxu0 %v1696_v7 }
  0x80   : > { %1428 = vmatmul.mubr.msk.f32.gmra.mrb[52].mxu0 %vm342_vm0, %v308_v37 }
  0x81   : > { %665 = vmatprep.mubr.f32.mxu0 %v1696_v7 }
  0x84   : > { %1429 = vmatmul.mubr.msk.f32.gmra.mrb[54].mxu0 %vm342_vm0, %v309_v38 }
  0x85   : > { %671 = vmatprep.mubr.f32.mxu0 %v1696_v7 }
  0x88   : > { %1430 = vmatmul.mubr.msk.f32.gmra.mrb[56].mxu0 %vm342_vm0, %v310_v39 }
  0x89   : > { %677 = vmatprep.mubr.f32.mxu0 %v1696_v7 }
  0x8c   : > { %1431 = vmatmul.mubr.msk.f32.gmra.mrb[58].mxu0 %vm342_vm0, %v311_v40 }
  0x8d   : > { %683 = vmatprep.mubr.f32.mxu0 %v1696_v7 }
  0x90   : > { %1432 = vmatmul.mubr.msk.f32.gmra.mrb[60].mxu0 %vm342_vm0, %v312_v41 }
  0x91   : > { %689 = vmatprep.mubr.f32.mxu0 %v1696_v7 }
  0x94   : > { %1433 = vmatmul.mubr.msk.f32.gmra.mrb[62].mxu0 %vm342_vm0, %v313_v42 }
  0xeb   : > { %v505_v50 = vpop.f32.mrb[0].mxu0 }
  0xec   : > { %v506_v51 = vadd.f32 %v505_v50, %v2015_v48  ;;  %v507_v52 = vpop.f32.mrb[1].mxu0 }
  0xed   : > { %v508_v7 = vadd.f32 %v507_v52, %v2017_v49 }
  0xee   : > { %v696_v60 = vmax.f32 %v506_v51, 0.0 }
  0xef   : > { %v511_v56 = vpop.f32.mrb[2].mxu0  ;;  %v697_v57 = vmax.f32 %v508_v7, 0.0 }
  0xf0   : > { %v512_v61 = vadd.f32 %v511_v56, %v2015_v48  ;;  %v513_v62 = vpop.f32.mrb[3].mxu0 }
  0xf1   : > { %v514_v2 = vadd.f32 %v513_v62, %v2017_v49  ;;  %863 = vmatprep.mubr.f32.mxu1 %v697_v57 }
  0xf2   : > { %864 = vmatmul.mubr.f32.vlgmr.msra.gmra.mrb[0].mxu1 %v696_v60  ;;  %v698_v6 = vmax.f32 %v512_v61, 0.0 }
  0xf3   : > { %v699_v3 = vmax.f32 %v514_v2, 0.0  ;;  %v517_v4 = vpop.f32.mrb[4].mxu0  ;;  %1670 = vmatpush3.bf16.msra.mxu1 %v1630_v58 }
  0xf4   : > { %v518_v8 = vadd.f32 %v517_v4, %v2015_v48  ;;  %v519_v9 = vpop.f32.mrb[5].mxu0  ;;  %1663 = vmatprep.subr.bf16.mxu1 %v1634_v63 }
  0xf5   : > { %v520_v12 = vadd.f32 %v519_v9, %v2017_v49  ;;  %868 = vmatprep.mubr.f32.mxu1 %v699_v3 }
  0xf6   : > { %869 = vmatmul.mubr.f32.gmra.mrb[2].mxu1 %v698_v6  ;;  %v700_v16 = vmax.f32 %v518_v8, 0.0 }
  0xf7   : > { %v701_v13 = vmax.f32 %v520_v12, 0.0  ;;  %v523_v14 = vpop.f32.mrb[6].mxu0  ;;  %1671 = vmatpush3.bf16.msra.mxu1 %v1634_v63 }
  0xf8   : > { %v524_v17 = vadd.f32 %v523_v14, %v2015_v48  ;;  %v525_v18 = vpop.f32.mrb[7].mxu0  ;;  %1664 = vmatprep.subr.bf16.mxu1 %v1638_v5 }
  0xf9   : > { %v526_v21 = vadd.f32 %v525_v18, %v2017_v49  ;;  %873 = vmatprep.mubr.f32.mxu1 %v701_v13 }
  0xfa   : > { %874 = vmatmul.mubr.f32.gmra.mrb[4].mxu1 %v700_v16  ;;  %v702_v25 = vmax.f32 %v524_v17, 0.0 }
  0xfb   : > { %v703_v22 = vmax.f32 %v526_v21, 0.0  ;;  %v529_v23 = vpop.f32.mrb[8].mxu0  ;;  %1672 = vmatpush3.bf16.msra.mxu1 %v1638_v5 }
  0xfc   : > { %v530_v27 = vadd.f32 %v529_v23, %v2015_v48  ;;  %v531_v28 = vpop.f32.mrb[9].mxu0  ;;  %1665 = vmatprep.subr.bf16.mxu1 %v1642_v15 }
  0xfd   : > { %v532_v31 = vadd.f32 %v531_v28, %v2017_v49  ;;  %878 = vmatprep.mubr.f32.mxu1 %v703_v22 }
  0xfe   : > { %879 = vmatmul.mubr.f32.gmra.mrb[6].mxu1 %v702_v25  ;;  %v704_v26 = vmax.f32 %v530_v27, 0.0 }
  0xff   : > { %v705_v32 = vmax.f32 %v532_v31, 0.0  ;;  %v535_v33 = vpop.f32.mrb[10].mxu0  ;;  %1673 = vmatpush3.bf16.msra.mxu1 %v1642_v15 }
 0x100   : > { %v536_v35 = vadd.f32 %v535_v33, %v2015_v48  ;;  %v537_v36 = vpop.f32.mrb[11].mxu0  ;;  %1666 = vmatprep.subr.bf16.mxu1 %v1646_v24 }
 0x101   : > { %v538_v37 = vadd.f32 %v537_v36, %v2017_v49  ;;  %883 = vmatprep.mubr.f32.mxu1 %v705_v32 }
 0x102   : > { %884 = vmatmul.mubr.f32.gmra.mrb[8].mxu1 %v704_v26  ;;  %v706_v40 = vmax.f32 %v536_v35, 0.0 }
 0x103   : > { %v707_v38 = vmax.f32 %v538_v37, 0.0  ;;  %v541_v39 = vpop.f32.mrb[12].mxu0  ;;  %1674 = vmatpush3.bf16.msra.mxu1 %v1646_v24 }
 0x104   : > { %v542_v41 = vadd.f32 %v541_v39, %v2015_v48  ;;  %v543_v42 = vpop.f32.mrb[13].mxu0  ;;  %1667 = vmatprep.subr.bf16.mxu1 %v1650_v34 }
 0x105   : > { %v544_v43 = vadd.f32 %v543_v42, %v2017_v49  ;;  %888 = vmatprep.mubr.f32.mxu1 %v707_v38 }
 0x106   : > { %889 = vmatmul.mubr.f32.gmra.mrb[10].mxu1 %v706_v40  ;;  %v708_v46 = vmax.f32 %v542_v41, 0.0 }
 0x107   : > { %v709_v44 = vmax.f32 %v544_v43, 0.0  ;;  %v547_v45 = vpop.f32.mrb[14].mxu0  ;;  %1675 = vmatpush3.bf16.msra.mxu1 %v1650_v34 }
 0x108   : > { %v548_v47 = vadd.f32 %v547_v45, %v2015_v48  ;;  %v549_v50 = vpop.f32.mrb[15].mxu0 }
 0x109   : > { %v550_v51 = vadd.f32 %v549_v50, %v2017_v49  ;;  %893 = vmatprep.mubr.f32.mxu1 %v709_v44 }
 0x10a   : > { %894 = vmatmul.mubr.f32.gmra.mrb[12].mxu1 %v708_v46  ;;  %v710_v53 = vmax.f32 %v548_v47, 0.0 }
 0x10b   : > { %v711_v52 = vmax.f32 %v550_v51, 0.0  ;;  %v553_v7 = vpop.f32.mrb[16].mxu0 }
 0x10c   : > { %v554_v54 = vadd.f32 %v553_v7, %v2015_v48  ;;  %v555_v55 = vpop.f32.mrb[17].mxu0 }
 0x10d   : > { %v556_v56 = vadd.f32 %v555_v55, %v2017_v49  ;;  %898 = vmatprep.mubr.f32.mxu1 %v711_v52 }
 0x10e   : > { %899 = vmatmul.mubr.f32.gmra.mrb[14].mxu1 %v710_v53  ;;  %v712_v59 = vmax.f32 %v554_v54, 0.0 }
 0x10f   : > { %v713_v57 = vmax.f32 %v556_v56, 0.0  ;;  %v559_v58 = vpop.f32.mrb[18].mxu0 }
 0x110   : > { %v560_v60 = vadd.f32 %v559_v58, %v2015_v48  ;;  %v561_v61 = vpop.f32.mrb[19].mxu0 }
 0x111   : > { %v562_v62 = vadd.f32 %v561_v61, %v2017_v49  ;;  %903 = vmatprep.mubr.f32.mxu1 %v713_v57 }
 0x112   : > { %904 = vmatmul.mubr.f32.gmra.mrb[16].mxu1 %v712_v59  ;;  %v714_v1 = vmax.f32 %v560_v60, 0.0 }
 0x113   : > { %v715_v63 = vmax.f32 %v562_v62, 0.0  ;;  %v565_v0 = vpop.f32.mrb[20].mxu0 }
 0x114   : > { %v566_v2 = vadd.f32 %v565_v0, %v2015_v48  ;;  %v567_v3 = vpop.f32.mrb[21].mxu0 }
 0x115   : > { %v568_v4 = vadd.f32 %v567_v3, %v2017_v49  ;;  %908 = vmatprep.mubr.f32.mxu1 %v715_v63 }
 0x116   : > { %909 = vmatmul.mubr.f32.gmra.mrb[18].mxu1 %v714_v1  ;;  %v716_v8 = vmax.f32 %v566_v2, 0.0 }
 0x117   : > { %v717_v5 = vmax.f32 %v568_v4, 0.0  ;;  %v571_v6 = vpop.f32.mrb[22].mxu0 }
 0x118   : > { %v572_v9 = vadd.f32 %v571_v6, %v2015_v48  ;;  %v573_v10 = vpop.f32.mrb[23].mxu0 }
 0x119   : > { %v574_v11 = vadd.f32 %v573_v10, %v2017_v49  ;;  %913 = vmatprep.mubr.f32.mxu1 %v717_v5 }
 0x11a   : > { %914 = vmatmul.mubr.f32.gmra.mrb[20].mxu1 %v716_v8  ;;  %v718_v14 = vmax.f32 %v572_v9, 0.0 }
 0x11b   : > { %v719_v12 = vmax.f32 %v574_v11, 0.0  ;;  %v577_v13 = vpop.f32.mrb[24].mxu0 }
 0x11c   : > { %v578_v15 = vadd.f32 %v577_v13, %v2015_v48  ;;  %v579_v16 = vpop.f32.mrb[25].mxu0  ;;  %v1069_v13 = vld [vmem:[%s2284_s5 + $0x68] sm:$0xff] }
 0x11d   : > { %v580_v17 = vadd.f32 %v579_v16, %v2017_v49  ;;  %918 = vmatprep.mubr.f32.mxu1 %v719_v12  ;;  %v1068_v12 = vld [vmem:[%s2284_s5 + $0x60] sm:$0xff] }
 0x11e   : > { %919 = vmatmul.mubr.f32.gmra.mrb[22].mxu1 %v718_v14  ;;  %v720_v20 = vmax.f32 %v578_v15, 0.0 }
 0x11f   : > { %v721_v18 = vmax.f32 %v580_v17, 0.0  ;;  %v583_v19 = vpop.f32.mrb[26].mxu0  ;;  %v1654_v17 = vpack.c.bf16 %v1069_v13, %v1068_v12 }
 0x120   : > { %v584_v21 = vadd.f32 %v583_v19, %v2015_v48  ;;  %v585_v22 = vpop.f32.mrb[27].mxu0 }
 0x121   : > { %v586_v23 = vadd.f32 %v585_v22, %v2017_v49  ;;  %923 = vmatprep.mubr.f32.mxu1 %v721_v18  ;;  %1655 = vmatprep.subr.bf16.mxu0 %v1654_v17  ;;  %v1071_v22 = vld [vmem:[%s2284_s5 + $0x78] sm:$0xff] }
 0x122   : > { %924 = vmatmul.mubr.f32.gmra.mrb[24].mxu1 %v720_v20  ;;  %v722_v27 = vmax.f32 %v584_v21, 0.0  ;;  %1657 = vmatpush3.bf16.msra.mxu0 %v1654_v17  ;;  %v1070_v21 = vld [vmem:[%s2284_s5 + $0x70] sm:$0xff] }
 0x123   : > { %v723_v24 = vmax.f32 %v586_v23, 0.0  ;;  %v589_v25 = vpop.f32.mrb[28].mxu0  ;;  %1668 = vmatprep.subr.bf16.mxu1 %v1654_v17 }
 0x124   : > { %v590_v28 = vadd.f32 %v589_v25, %v2015_v48  ;;  %v591_v29 = vpop.f32.mrb[29].mxu0  ;;  %1676 = vmatpush3.bf16.msra.mxu1 %v1654_v17 }
 0x125   : > { %v592_v30 = vadd.f32 %v591_v29, %v2017_v49  ;;  %928 = vmatprep.mubr.f32.mxu1 %v723_v24 }
 0x126   : > { %929 = vmatmul.mubr.f32.gmra.mrb[26].mxu1 %v722_v27  ;;  %v724_v33 = vmax.f32 %v590_v28, 0.0  ;;  %v1658_v27 = vpack.c.bf16 %v1071_v22, %v1070_v21 }
 0x127   : > { %v725_v31 = vmax.f32 %v592_v30, 0.0  ;;  %v595_v32 = vpop.f32.mrb[30].mxu0 }
 0x128   : > { %v596_v34 = vadd.f32 %v595_v32, %v2015_v48  ;;  %v597_v26 = vpop.f32.mrb[31].mxu0  ;;  %1659 = vmatprep.subr.bf16.mxu0 %v1658_v27  ;;  %1669 = vmatprep.subr.bf16.mxu1 %v1658_v27 }
 0x129   : > { %v598_v35 = vadd.f32 %v597_v26, %v2017_v49  ;;  %933 = vmatprep.mubr.f32.mxu1 %v725_v31  ;;  %1661 = vmatpush3.bf16.msra.mxu0 %v1658_v27 }
 0x12a   : > { %934 = vmatmul.mubr.f32.gmra.mrb[28].mxu1 %v724_v33  ;;  %v726_v38 = vmax.f32 %v596_v34, 0.0 }
 0x12b   : > { %v727_v36 = vmax.f32 %v598_v35, 0.0  ;;  %v601_v37 = vpop.f32.mrb[32].mxu0  ;;  %1677 = vmatpush3.bf16.msra.mxu1 %v1658_v27 }
 0x12c   : > { %v602_v39 = vadd.f32 %v601_v37, %v2015_v48  ;;  %v603_v40 = vpop.f32.mrb[33].mxu0 }
 0x12d   : > { %v604_v41 = vadd.f32 %v603_v40, %v2017_v49  ;;  %938 = vmatprep.mubr.f32.mxu1 %v727_v36 }
 0x12e   : > { %939 = vmatmul.mubr.f32.gmra.mrb[30].mxu1 %v726_v38  ;;  %v728_v44 = vmax.f32 %v602_v39, 0.0 }
 0x12f   : > { %v729_v42 = vmax.f32 %v604_v41, 0.0  ;;  %v607_v43 = vpop.f32.mrb[34].mxu0 }
 0x130   : > { %v608_v45 = vadd.f32 %v607_v43, %v2015_v48  ;;  %v609_v46 = vpop.f32.mrb[35].mxu0 }
 0x131   : > { %v610_v47 = vadd.f32 %v609_v46, %v2017_v49  ;;  %943 = vmatprep.mubr.f32.mxu1 %v729_v42 }
 0x132   : > { %944 = vmatmul.mubr.f32.gmra.mrb[32].mxu1 %v728_v44  ;;  %v730_v52 = vmax.f32 %v608_v45, 0.0 }
 0x133   : > { %v731_v50 = vmax.f32 %v610_v47, 0.0  ;;  %v613_v51 = vpop.f32.mrb[36].mxu0 }
 0x134   : > { %v614_v7 = vadd.f32 %v613_v51, %v2015_v48  ;;  %v615_v53 = vpop.f32.mrb[37].mxu0 }
 0x135   : > { %v616_v54 = vadd.f32 %v615_v53, %v2017_v49  ;;  %948 = vmatprep.mubr.f32.mxu1 %v731_v50 }
 0x136   : > { %949 = vmatmul.mubr.f32.gmra.mrb[34].mxu1 %v730_v52  ;;  %v732_v57 = vmax.f32 %v614_v7, 0.0 }
 0x137   : > { %v733_v55 = vmax.f32 %v616_v54, 0.0  ;;  %v619_v56 = vpop.f32.mrb[38].mxu0 }
 0x138   : > { %v620_v58 = vadd.f32 %v619_v56, %v2015_v48  ;;  %v621_v59 = vpop.f32.mrb[39].mxu0 }
 0x139   : > { %v622_v60 = vadd.f32 %v621_v59, %v2017_v49  ;;  %953 = vmatprep.mubr.f32.mxu1 %v733_v55 }
 0x13a   : > { %954 = vmatmul.mubr.f32.gmra.mrb[36].mxu1 %v732_v57  ;;  %v734_v63 = vmax.f32 %v620_v58, 0.0 }
 0x13b   : > { %v735_v61 = vmax.f32 %v622_v60, 0.0  ;;  %v625_v62 = vpop.f32.mrb[40].mxu0 }
 0x13c   : > { %v626_v0 = vadd.f32 %v625_v62, %v2015_v48  ;;  %v627_v1 = vpop.f32.mrb[41].mxu0 }
 0x13d   : > { %v628_v2 = vadd.f32 %v627_v1, %v2017_v49  ;;  %958 = vmatprep.mubr.f32.mxu1 %v735_v61 }
 0x13e   : > { %959 = vmatmul.mubr.f32.gmra.mrb[38].mxu1 %v734_v63  ;;  %v736_v5 = vmax.f32 %v626_v0, 0.0 }
 0x13f   : > { %v737_v3 = vmax.f32 %v628_v2, 0.0  ;;  %v631_v4 = vpop.f32.mrb[42].mxu0 }
 0x140   : > { %v632_v6 = vadd.f32 %v631_v4, %v2015_v48  ;;  %v633_v8 = vpop.f32.mrb[43].mxu0 }
 0x141   : > { %v634_v9 = vadd.f32 %v633_v8, %v2017_v49  ;;  %963 = vmatprep.mubr.f32.mxu1 %v737_v3 }
 0x142   : > { %964 = vmatmul.mubr.f32.gmra.mrb[40].mxu1 %v736_v5  ;;  %v738_v14 = vmax.f32 %v632_v6, 0.0 }
 0x143   : > { %v739_v10 = vmax.f32 %v634_v9, 0.0  ;;  %v637_v11 = vpop.f32.mrb[44].mxu0 }
 0x144   : > { %v638_v15 = vadd.f32 %v637_v11, %v2015_v48  ;;  %v639_v16 = vpop.f32.mrb[45].mxu0 }
 0x145   : > { %v640_v18 = vadd.f32 %v639_v16, %v2017_v49  ;;  %968 = vmatprep.mubr.f32.mxu1 %v739_v10  ;;  %v2134_v16 = vld [vmem:[%s2283_s4] ss:$0 sm:$0xff] }
 0x146   : > { %969 = vmatmul.mubr.f32.gmra.mrb[42].mxu1 %v738_v14  ;;  %v740_v23 = vmax.f32 %v638_v15, 0.0 }
 0x147   : > { %v741_v19 = vmax.f32 %v640_v18, 0.0  ;;  %v643_v20 = vpop.f32.mrb[46].mxu0 }
 0x148   : > { %v644_v24 = vadd.f32 %v643_v20, %v2015_v48  ;;  %v645_v25 = vpop.f32.mrb[47].mxu0 }
 0x149   : > { %v646_v28 = vadd.f32 %v645_v25, %v2017_v49  ;;  %973 = vmatprep.mubr.f32.mxu1 %v741_v19 }
 0x14a   : > { %974 = vmatmul.mubr.f32.gmra.mrb[44].mxu1 %v740_v23  ;;  %v742_v31 = vmax.f32 %v644_v24, 0.0 }
 0x14b   : > { %v743_v29 = vmax.f32 %v646_v28, 0.0  ;;  %v649_v30 = vpop.f32.mrb[48].mxu0 }
 0x14c   : > { %v650_v32 = vadd.f32 %v649_v30, %v2015_v48  ;;  %v651_v33 = vpop.f32.mrb[49].mxu0 }
 0x14d   : > { %v652_v34 = vadd.f32 %v651_v33, %v2017_v49  ;;  %978 = vmatprep.mubr.f32.mxu1 %v743_v29 }
 0x14e   : > { %979 = vmatmul.mubr.f32.gmra.mrb[46].mxu1 %v742_v31  ;;  %v744_v36 = vmax.f32 %v650_v32, 0.0 }
 0x14f   : > { %v745_v26 = vmax.f32 %v652_v34, 0.0  ;;  %v655_v35 = vpop.f32.mrb[50].mxu0 }
 0x150   : > { %v656_v37 = vadd.f32 %v655_v35, %v2015_v48  ;;  %v657_v38 = vpop.f32.mrb[51].mxu0 }
 0x151   : > { %v658_v39 = vadd.f32 %v657_v38, %v2017_v49  ;;  %983 = vmatprep.mubr.f32.mxu1 %v745_v26 }
 0x152   : > { %984 = vmatmul.mubr.f32.gmra.mrb[48].mxu1 %v744_v36  ;;  %v746_v42 = vmax.f32 %v656_v37, 0.0 }
 0x153   : > { %v747_v40 = vmax.f32 %v658_v39, 0.0  ;;  %v661_v41 = vpop.f32.mrb[52].mxu0 }
 0x154   : > { %v662_v43 = vadd.f32 %v661_v41, %v2015_v48  ;;  %v663_v44 = vpop.f32.mrb[53].mxu0 }
 0x155   : > { %v664_v45 = vadd.f32 %v663_v44, %v2017_v49  ;;  %988 = vmatprep.mubr.f32.mxu1 %v747_v40 }
 0x156   : > { %989 = vmatmul.mubr.f32.gmra.mrb[50].mxu1 %v746_v42  ;;  %v748_v50 = vmax.f32 %v662_v43, 0.0 }
 0x157   : > { %v749_v46 = vmax.f32 %v664_v45, 0.0  ;;  %v667_v47 = vpop.f32.mrb[54].mxu0 }
 0x158   : > { %v668_v51 = vadd.f32 %v667_v47, %v2015_v48  ;;  %v669_v52 = vpop.f32.mrb[55].mxu0 }
 0x159   : > { %v670_v7 = vadd.f32 %v669_v52, %v2017_v49  ;;  %993 = vmatprep.mubr.f32.mxu1 %v749_v46 }
 0x15a   : > { %994 = vmatmul.mubr.f32.gmra.mrb[52].mxu1 %v748_v50  ;;  %v750_v55 = vmax.f32 %v668_v51, 0.0 }
 0x15b   : > { %v751_v53 = vmax.f32 %v670_v7, 0.0  ;;  %v673_v54 = vpop.f32.mrb[56].mxu0 }
 0x15c   : > { %v674_v56 = vadd.f32 %v673_v54, %v2015_v48  ;;  %v675_v57 = vpop.f32.mrb[57].mxu0 }
 0x15d   : > { %v676_v58 = vadd.f32 %v675_v57, %v2017_v49  ;;  %998 = vmatprep.mubr.f32.mxu1 %v751_v53 }
 0x15e   : > { %999 = vmatmul.mubr.f32.gmra.mrb[54].mxu1 %v750_v55  ;;  %v752_v61 = vmax.f32 %v674_v56, 0.0 }
 0x15f   : > { %v753_v59 = vmax.f32 %v676_v58, 0.0  ;;  %v679_v60 = vpop.f32.mrb[58].mxu0 }
 0x160   : > { %v680_v62 = vadd.f32 %v679_v60, %v2015_v48  ;;  %v681_v63 = vpop.f32.mrb[59].mxu0 }
 0x161   : > { %v682_v0 = vadd.f32 %v681_v63, %v2017_v49  ;;  %1003 = vmatprep.mubr.f32.mxu1 %v753_v59 }
 0x162   : > { %1004 = vmatmul.mubr.f32.gmra.mrb[56].mxu1 %v752_v61  ;;  %v754_v3 = vmax.f32 %v680_v62, 0.0 }
 0x163   : > { %v755_v1 = vmax.f32 %v682_v0, 0.0  ;;  %v685_v2 = vpop.f32.mrb[60].mxu0 }
 0x164   : > { %v686_v4 = vadd.f32 %v685_v2, %v2015_v48  ;;  %v687_v5 = vpop.f32.mrb[61].mxu0 }
 0x165   : > { %v688_v6 = vadd.f32 %v687_v5, %v2017_v49  ;;  %1008 = vmatprep.mubr.f32.mxu1 %v755_v1 }
 0x166   : > { %1009 = vmatmul.mubr.f32.gmra.mrb[58].mxu1 %v754_v3  ;;  %v756_v10 = vmax.f32 %v686_v4, 0.0 }
 0x167   : > { %v757_v8 = vmax.f32 %v688_v6, 0.0  ;;  %v691_v9 = vpop.f32.mrb[62].mxu0 }
 0x168   : > { %v692_v11 = vadd.f32 %v691_v9, %v2015_v48  ;;  %v693_v12 = vpop.f32.mrb[63].mxu0 }
 0x169   : > { %v694_v13 = vadd.f32 %v693_v12, %v2017_v49  ;;  %1013 = vmatprep.mubr.f32.mxu1 %v757_v8 }
 0x16a   : > { %1014 = vmatmul.mubr.f32.gmra.mrb[60].mxu1 %v756_v10  ;;  %v758_v15 = vmax.f32 %v692_v11, 0.0 }
 0x16b   : > { %v759_v14 = vmax.f32 %v694_v13, 0.0 }
 0x16d   : > { %1018 = vmatprep.mubr.f32.mxu1 %v759_v14 }
 0x16e   : > { %1019 = vmatmul.mubr.f32.gmra.mrb[62].mxu1 %v758_v15 }
 0x1c5   : > { %v865_v17 = vpop.f32.mrb[0].mxu1 }
 0x1c6   : > { %v866_v18 = vadd.f32 %v2134_v16, %v865_v17  ;;  %v867_v19 = vpop.f32.mrb[1].mxu1 }
 0x1c8   : > { %v1024_v20 = vmax.f32 %v866_v18, 0.0 }
 0x1c9   : > { %v870_v48 = vpop.f32.mrb[2].mxu1 }
 0x1ca   : > { %v871_v21 = vadd.f32 %v2134_v16, %v870_v48  ;;  %v872_v49 = vpop.f32.mrb[3].mxu1  ;;  %1518 = vmatprep.mubr.f32.mxu0 %v1024_v20 }
 0x1cc   : > { %v1025_v22 = vmax.f32 %v871_v21, 0.0 }
 0x1cd   : > { %v875_v23 = vpop.f32.mrb[4].mxu1 }
 0x1ce   : > { %v876_v24 = vadd.f32 %v2134_v16, %v875_v23  ;;  %v877_v25 = vpop.f32.mrb[5].mxu1  ;;  %1519 = vmatmul.mubr.f32.vlgmr.msra.gmra.mrb[64].mxu0 %v1025_v22 }
 0x1d0   : > { %v1026_v27 = vmax.f32 %v876_v24, 0.0 }
 0x1d1   : > { %v880_v28 = vpop.f32.mrb[6].mxu1 }
 0x1d2   : > { %v881_v29 = vadd.f32 %v2134_v16, %v880_v28  ;;  %v882_v30 = vpop.f32.mrb[7].mxu1  ;;  %1521 = vmatprep.mubr.f32.mxu0 %v1026_v27 }
 0x1d4   : > { %v1027_v31 = vmax.f32 %v881_v29, 0.0 }
 0x1d5   : > { %v885_v32 = vpop.f32.mrb[8].mxu1 }
 0x1d6   : > { %v886_v33 = vadd.f32 %v2134_v16, %v885_v32  ;;  %v887_v34 = vpop.f32.mrb[9].mxu1  ;;  %1522 = vmatmul.mubr.f32.gmra.mrb[66].mxu0 %v1027_v31 }
 0x1d8   : > { %v1028_v26 = vmax.f32 %v886_v33, 0.0 }
 0x1d9   : > { %v890_v35 = vpop.f32.mrb[10].mxu1 }
 0x1da   : > { %v891_v36 = vadd.f32 %v2134_v16, %v890_v35  ;;  %v892_v37 = vpop.f32.mrb[11].mxu1  ;;  %1524 = vmatprep.mubr.f32.mxu0 %v1028_v26 }
 0x1dc   : > { %v1029_v38 = vmax.f32 %v891_v36, 0.0 }
 0x1dd   : > { %v895_v39 = vpop.f32.mrb[12].mxu1 }
 0x1de   : > { %v896_v40 = vadd.f32 %v2134_v16, %v895_v39  ;;  %v897_v41 = vpop.f32.mrb[13].mxu1  ;;  %1525 = vmatmul.mubr.f32.gmra.mrb[68].mxu0 %v1029_v38 }
 0x1e0   : > { %v1030_v42 = vmax.f32 %v896_v40, 0.0 }
 0x1e1   : > { %v900_v43 = vpop.f32.mrb[14].mxu1 }
 0x1e2   : > { %v901_v44 = vadd.f32 %v2134_v16, %v900_v43  ;;  %v902_v45 = vpop.f32.mrb[15].mxu1  ;;  %1527 = vmatprep.mubr.f32.mxu0 %v1030_v42 }
 0x1e4   : > { %v1031_v46 = vmax.f32 %v901_v44, 0.0 }
 0x1e5   : > { %v905_v47 = vpop.f32.mrb[16].mxu1 }
 0x1e6   : > { %v906_v50 = vadd.f32 %v2134_v16, %v905_v47  ;;  %v907_v51 = vpop.f32.mrb[17].mxu1  ;;  %1528 = vmatmul.mubr.f32.gmra.mrb[70].mxu0 %v1031_v46 }
 0x1e8   : > { %v1032_v52 = vmax.f32 %v906_v50, 0.0 }
 0x1e9   : > { %v910_v7 = vpop.f32.mrb[18].mxu1 }
 0x1ea   : > { %v911_v53 = vadd.f32 %v2134_v16, %v910_v7  ;;  %v912_v54 = vpop.f32.mrb[19].mxu1  ;;  %1530 = vmatprep.mubr.f32.mxu0 %v1032_v52 }
 0x1ec   : > { %v1033_v55 = vmax.f32 %v911_v53, 0.0 }
 0x1ed   : > { %v915_v56 = vpop.f32.mrb[20].mxu1 }
 0x1ee   : > { %v916_v57 = vadd.f32 %v2134_v16, %v915_v56  ;;  %v917_v58 = vpop.f32.mrb[21].mxu1  ;;  %1531 = vmatmul.mubr.f32.gmra.mrb[72].mxu0 %v1033_v55 }
 0x1f0   : > { %v1034_v59 = vmax.f32 %v916_v57, 0.0 }
 0x1f1   : > { %v920_v60 = vpop.f32.mrb[22].mxu1 }
 0x1f2   : > { %v921_v61 = vadd.f32 %v2134_v16, %v920_v60  ;;  %v922_v62 = vpop.f32.mrb[23].mxu1  ;;  %1533 = vmatprep.mubr.f32.mxu0 %v1034_v59 }
 0x1f4   : > { %v1035_v63 = vmax.f32 %v921_v61, 0.0 }
 0x1f5   : > { %v925_v0 = vpop.f32.mrb[24].mxu1 }
 0x1f6   : > { %v926_v1 = vadd.f32 %v2134_v16, %v925_v0  ;;  %v927_v2 = vpop.f32.mrb[25].mxu1  ;;  %1534 = vmatmul.mubr.f32.gmra.mrb[74].mxu0 %v1035_v63 }
 0x1f8   : > { %v1036_v3 = vmax.f32 %v926_v1, 0.0 }
 0x1f9   : > { %v930_v4 = vpop.f32.mrb[26].mxu1 }
 0x1fa   : > { %v931_v5 = vadd.f32 %v2134_v16, %v930_v4  ;;  %v932_v6 = vpop.f32.mrb[27].mxu1  ;;  %1536 = vmatprep.mubr.f32.mxu0 %v1036_v3 }
 0x1fc   : > { %v1037_v8 = vmax.f32 %v931_v5, 0.0 }
 0x1fd   : > { %v935_v9 = vpop.f32.mrb[28].mxu1 }
 0x1fe   : > { %v936_v10 = vadd.f32 %v2134_v16, %v935_v9  ;;  %v937_v11 = vpop.f32.mrb[29].mxu1  ;;  %1537 = vmatmul.mubr.f32.gmra.mrb[76].mxu0 %v1037_v8 }
 0x200   : > { %v1038_v12 = vmax.f32 %v936_v10, 0.0 }
 0x201   : > { %v940_v13 = vpop.f32.mrb[30].mxu1 }
 0x202   : > { %v941_v14 = vadd.f32 %v2134_v16, %v940_v13  ;;  %v942_v15 = vpop.f32.mrb[31].mxu1  ;;  %1539 = vmatprep.mubr.f32.mxu0 %v1038_v12 }
 0x204   : > { %v1039_v17 = vmax.f32 %v941_v14, 0.0 }
 0x205   : > { %v945_v18 = vpop.f32.mrb[32].mxu1 }
 0x206   : > { %v946_v19 = vadd.f32 %v2134_v16, %v945_v18  ;;  %v947_v20 = vpop.f32.mrb[33].mxu1  ;;  %1540 = vmatmul.mubr.f32.gmra.mrb[78].mxu0 %v1039_v17 }
 0x208   : > { %v1040_v48 = vmax.f32 %v946_v19, 0.0  ;;  %v2171_v19 = vld [vmem:[%s2285_s6] ss:$0 sm:$0xff] }
 0x209   : > { %v950_v21 = vpop.f32.mrb[34].mxu1 }
 0x20a   : > { %v951_v49 = vadd.f32 %v2134_v16, %v950_v21  ;;  %v952_v22 = vpop.f32.mrb[35].mxu1  ;;  %1542 = vmatprep.mubr.f32.mxu0 %v1040_v48 }
 0x20c   : > { %v1041_v23 = vmax.f32 %v951_v49, 0.0 }
 0x20d   : > { %v955_v24 = vpop.f32.mrb[36].mxu1 }
 0x20e   : > { %v956_v25 = vadd.f32 %v2134_v16, %v955_v24  ;;  %v957_v27 = vpop.f32.mrb[37].mxu1  ;;  %1543 = vmatmul.mubr.f32.gmra.mrb[80].mxu0 %v1041_v23 }
 0x210   : > { %v1042_v28 = vmax.f32 %v956_v25, 0.0 }
 0x211   : > { %v960_v29 = vpop.f32.mrb[38].mxu1 }
 0x212   : > { %v961_v30 = vadd.f32 %v2134_v16, %v960_v29  ;;  %v962_v31 = vpop.f32.mrb[39].mxu1  ;;  %1545 = vmatprep.mubr.f32.mxu0 %v1042_v28 }
 0x214   : > { %v1043_v32 = vmax.f32 %v961_v30, 0.0 }
 0x215   : > { %v965_v33 = vpop.f32.mrb[40].mxu1 }
 0x216   : > { %v966_v34 = vadd.f32 %v2134_v16, %v965_v33  ;;  %v967_v26 = vpop.f32.mrb[41].mxu1  ;;  %1546 = vmatmul.mubr.f32.gmra.mrb[82].mxu0 %v1043_v32 }
 0x218   : > { %v1044_v35 = vmax.f32 %v966_v34, 0.0 }
 0x219   : > { %v970_v36 = vpop.f32.mrb[42].mxu1 }
 0x21a   : > { %v971_v37 = vadd.f32 %v2134_v16, %v970_v36  ;;  %v972_v38 = vpop.f32.mrb[43].mxu1  ;;  %1548 = vmatprep.mubr.f32.mxu0 %v1044_v35 }
 0x21c   : > { %v1045_v39 = vmax.f32 %v971_v37, 0.0 }
 0x21d   : > { %v975_v40 = vpop.f32.mrb[44].mxu1 }
 0x21e   : > { %v976_v41 = vadd.f32 %v2134_v16, %v975_v40  ;;  %v977_v42 = vpop.f32.mrb[45].mxu1  ;;  %1549 = vmatmul.mubr.f32.gmra.mrb[84].mxu0 %v1045_v39 }
 0x220   : > { %v1046_v43 = vmax.f32 %v976_v41, 0.0 }
 0x221   : > { %v980_v44 = vpop.f32.mrb[46].mxu1 }
 0x222   : > { %v981_v45 = vadd.f32 %v2134_v16, %v980_v44  ;;  %v982_v46 = vpop.f32.mrb[47].mxu1  ;;  %1551 = vmatprep.mubr.f32.mxu0 %v1046_v43 }
 0x224   : > { %v1047_v47 = vmax.f32 %v981_v45, 0.0 }
 0x225   : > { %v985_v50 = vpop.f32.mrb[48].mxu1 }
 0x226   : > { %v986_v51 = vadd.f32 %v2134_v16, %v985_v50  ;;  %v987_v52 = vpop.f32.mrb[49].mxu1  ;;  %1552 = vmatmul.mubr.f32.gmra.mrb[86].mxu0 %v1047_v47 }
 0x228   : > { %v1048_v7 = vmax.f32 %v986_v51, 0.0 }
 0x229   : > { %v990_v53 = vpop.f32.mrb[50].mxu1 }
 0x22a   : > { %v991_v54 = vadd.f32 %v2134_v16, %v990_v53  ;;  %v992_v55 = vpop.f32.mrb[51].mxu1  ;;  %1554 = vmatprep.mubr.f32.mxu0 %v1048_v7 }
 0x22c   : > { %v1049_v56 = vmax.f32 %v991_v54, 0.0 }
 0x22d   : > { %v995_v57 = vpop.f32.mrb[52].mxu1 }
 0x22e   : > { %v996_v58 = vadd.f32 %v2134_v16, %v995_v57  ;;  %v997_v59 = vpop.f32.mrb[53].mxu1  ;;  %1555 = vmatmul.mubr.f32.gmra.mrb[88].mxu0 %v1049_v56 }
 0x230   : > { %v1050_v60 = vmax.f32 %v996_v58, 0.0 }
 0x231   : > { %v1000_v61 = vpop.f32.mrb[54].mxu1 }
 0x232   : > { %v1001_v62 = vadd.f32 %v2134_v16, %v1000_v61  ;;  %v1002_v63 = vpop.f32.mrb[55].mxu1  ;;  %1557 = vmatprep.mubr.f32.mxu0 %v1050_v60 }
 0x234   : > { %v1051_v0 = vmax.f32 %v1001_v62, 0.0 }
 0x235   : > { %v1005_v1 = vpop.f32.mrb[56].mxu1 }
 0x236   : > { %v1006_v2 = vadd.f32 %v2134_v16, %v1005_v1  ;;  %v1007_v3 = vpop.f32.mrb[57].mxu1  ;;  %1558 = vmatmul.mubr.f32.gmra.mrb[90].mxu0 %v1051_v0 }
 0x238   : > { %v1052_v4 = vmax.f32 %v1006_v2, 0.0 }
 0x239   : > { %v1010_v5 = vpop.f32.mrb[58].mxu1 }
 0x23a   : > { %v1011_v6 = vadd.f32 %v2134_v16, %v1010_v5  ;;  %v1012_v8 = vpop.f32.mrb[59].mxu1  ;;  %1560 = vmatprep.mubr.f32.mxu1 %v1052_v4 }
 0x23c   : > { %v1053_v9 = vmax.f32 %v1011_v6, 0.0 }
 0x23d   : > { %v1015_v10 = vpop.f32.mrb[60].mxu1 }
 0x23e   : > { %v1016_v11 = vadd.f32 %v2134_v16, %v1015_v10  ;;  %v1017_v12 = vpop.f32.mrb[61].mxu1  ;;  %1561 = vmatmul.mubr.f32.vlgmr.msra.gmra.mrb[64].mxu1 %v1053_v9 }
 0x240   : > { %v1054_v13 = vmax.f32 %v1016_v11, 0.0 }
 0x241   : > { %v1020_v14 = vpop.f32.mrb[62].mxu1 }
 0x242   : > { %v1021_v15 = vadd.f32 %v2134_v16, %v1020_v14  ;;  %v1022_v17 = vpop.f32.mrb[63].mxu1  ;;  %1563 = vmatprep.mubr.f32.mxu1 %v1054_v13 }
 0x244   : > { %v1055_v18 = vmax.f32 %v1021_v15, 0.0 }
 0x246   : > { %1564 = vmatmul.mubr.f32.gmra.mrb[66].mxu1 %v1055_v18 }
 0x2a1   : > { %v1520_v16 = vpop.f32.mrb[64].mxu0 }
 0x2a2   : > { %v1151_v20 = vadd.f32 %v1520_v16, %v2171_v19  ;;  %v1145_v48 = vpop.f32.mrb[65].mxu0 }
 0x2a3   : > { %v1146_v21 = vadd.f32 %v2171_v19, %v1145_v48 }
 0x2a4   : > { %1306 = vst.msk [vmem:[%s2178_s27 + $0x8] sm:$0xff] %vm1304_vm1, %v1151_v20 }
 0x2a5   : > { %1305 = vst.msk [vmem:[%s2178_s27] sm:$0xff] %vm1304_vm1, %v1146_v21 }
 0x2a9   : > { %v1523_v49 = vpop.f32.mrb[66].mxu0 }
 0x2aa   : > { %v1161_v22 = vadd.f32 %v1523_v49, %v2171_v19  ;;  %v1155_v23 = vpop.f32.mrb[67].mxu0 }
 0x2ab   : > { %v1156_v24 = vadd.f32 %v2171_v19, %v1155_v23 }
 0x2ac   : > { %1308 = vst.msk [vmem:[%s2178_s27 + $0x18] sm:$0xff] %vm1304_vm1, %v1161_v22 }
 0x2ad   : > { %1307 = vst.msk [vmem:[%s2178_s27 + $0x10] sm:$0xff] %vm1304_vm1, %v1156_v24 }
 0x2b1   : > { %v1526_v25 = vpop.f32.mrb[68].mxu0 }
 0x2b2   : > { %v1171_v27 = vadd.f32 %v1526_v25, %v2171_v19  ;;  %v1165_v28 = vpop.f32.mrb[69].mxu0 }
 0x2b3   : > { %v1166_v29 = vadd.f32 %v2171_v19, %v1165_v28 }
 0x2b4   : > { %1310 = vst.msk [vmem:[%s2178_s27 + $0x28] sm:$0xff] %vm1304_vm1, %v1171_v27 }
 0x2b5   : > { %1309 = vst.msk [vmem:[%s2178_s27 + $0x20] sm:$0xff] %vm1304_vm1, %v1166_v29 }
 0x2b9   : > { %v1529_v30 = vpop.f32.mrb[70].mxu0 }
 0x2ba   : > { %v1181_v31 = vadd.f32 %v1529_v30, %v2171_v19  ;;  %v1175_v32 = vpop.f32.mrb[71].mxu0 }
 0x2bb   : > { %v1176_v33 = vadd.f32 %v2171_v19, %v1175_v32 }
 0x2bc   : > { %1312 = vst.msk [vmem:[%s2178_s27 + $0x38] sm:$0xff] %vm1304_vm1, %v1181_v31 }
 0x2bd   : > { %1311 = vst.msk [vmem:[%s2178_s27 + $0x30] sm:$0xff] %vm1304_vm1, %v1176_v33 }
 0x2c1   : > { %v1532_v34 = vpop.f32.mrb[72].mxu0 }
 0x2c2   : > { %v1191_v26 = vadd.f32 %v1532_v34, %v2171_v19  ;;  %v1185_v35 = vpop.f32.mrb[73].mxu0 }
 0x2c3   : > { %v1186_v36 = vadd.f32 %v2171_v19, %v1185_v35 }
 0x2c4   : > { %1314 = vst.msk [vmem:[%s2178_s27 + $0x48] sm:$0xff] %vm1304_vm1, %v1191_v26 }
 0x2c5   : > { %1313 = vst.msk [vmem:[%s2178_s27 + $0x40] sm:$0xff] %vm1304_vm1, %v1186_v36 }
 0x2c9   : > { %v1535_v37 = vpop.f32.mrb[74].mxu0 }
 0x2ca   : > { %v1201_v38 = vadd.f32 %v1535_v37, %v2171_v19  ;;  %v1195_v39 = vpop.f32.mrb[75].mxu0 }
 0x2cb   : > { %v1196_v40 = vadd.f32 %v2171_v19, %v1195_v39 }
 0x2cc   : > { %1316 = vst.msk [vmem:[%s2178_s27 + $0x58] sm:$0xff] %vm1304_vm1, %v1201_v38 }
 0x2cd   : > { %1315 = vst.msk [vmem:[%s2178_s27 + $0x50] sm:$0xff] %vm1304_vm1, %v1196_v40 }
 0x2d1   : > { %v1538_v41 = vpop.f32.mrb[76].mxu0 }
 0x2d2   : > { %v1211_v42 = vadd.f32 %v1538_v41, %v2171_v19  ;;  %v1205_v43 = vpop.f32.mrb[77].mxu0 }
 0x2d3   : > { %v1206_v44 = vadd.f32 %v2171_v19, %v1205_v43 }
 0x2d4   : > { %1318 = vst.msk [vmem:[%s2178_s27 + $0x68] sm:$0xff] %vm1304_vm1, %v1211_v42 }
 0x2d5   : > { %1317 = vst.msk [vmem:[%s2178_s27 + $0x60] sm:$0xff] %vm1304_vm1, %v1206_v44 }
 0x2d9   : > { %v1541_v45 = vpop.f32.mrb[78].mxu0 }
 0x2da   : > { %v1221_v46 = vadd.f32 %v1541_v45, %v2171_v19  ;;  %v1215_v47 = vpop.f32.mrb[79].mxu0 }
 0x2db   : > { %v1216_v50 = vadd.f32 %v2171_v19, %v1215_v47 }
 0x2dc   : > { %1320 = vst.msk [vmem:[%s2178_s27 + $0x78] sm:$0xff] %vm1304_vm1, %v1221_v46 }
 0x2dd   : > { %1319 = vst.msk [vmem:[%s2178_s27 + $0x70] sm:$0xff] %vm1304_vm1, %v1216_v50 }
 0x2e1   : > { %v1544_v51 = vpop.f32.mrb[80].mxu0 }
 0x2e2   : > { %v1231_v52 = vadd.f32 %v1544_v51, %v2171_v19  ;;  %v1225_v7 = vpop.f32.mrb[81].mxu0 }
 0x2e3   : > { %v1226_v53 = vadd.f32 %v2171_v19, %v1225_v7 }
 0x2e4   : > { %1322 = vst.msk [vmem:[%s2178_s27 + $0x88] sm:$0xff] %vm1304_vm1, %v1231_v52 }
 0x2e5   : > { %1321 = vst.msk [vmem:[%s2178_s27 + $0x80] sm:$0xff] %vm1304_vm1, %v1226_v53 }
 0x2e9   : > { %v1547_v54 = vpop.f32.mrb[82].mxu0 }
 0x2ea   : > { %v1241_v55 = vadd.f32 %v1547_v54, %v2171_v19  ;;  %v1235_v56 = vpop.f32.mrb[83].mxu0 }
 0x2eb   : > { %v1236_v57 = vadd.f32 %v2171_v19, %v1235_v56 }
 0x2ec   : > { %1324 = vst.msk [vmem:[%s2178_s27 + $0x98] sm:$0xff] %vm1304_vm1, %v1241_v55 }
 0x2ed   : > { %1323 = vst.msk [vmem:[%s2178_s27 + $0x90] sm:$0xff] %vm1304_vm1, %v1236_v57 }
 0x2f1   : > { %v1550_v58 = vpop.f32.mrb[84].mxu0 }
 0x2f2   : > { %v1251_v59 = vadd.f32 %v1550_v58, %v2171_v19  ;;  %v1245_v60 = vpop.f32.mrb[85].mxu0 }
 0x2f3   : > { %v1246_v61 = vadd.f32 %v2171_v19, %v1245_v60 }
 0x2f4   : > { %1326 = vst.msk [vmem:[%s2178_s27 + $0xa8] sm:$0xff] %vm1304_vm1, %v1251_v59 }
 0x2f5   : > { %1325 = vst.msk [vmem:[%s2178_s27 + $0xa0] sm:$0xff] %vm1304_vm1, %v1246_v61 }
 0x2f9   : > { %v1553_v62 = vpop.f32.mrb[86].mxu0 }
 0x2fa   : > { %v1261_v63 = vadd.f32 %v1553_v62, %v2171_v19  ;;  %v1255_v0 = vpop.f32.mrb[87].mxu0 }
 0x2fb   : > { %v1256_v1 = vadd.f32 %v2171_v19, %v1255_v0 }
 0x2fc   : > { %1328 = vst.msk [vmem:[%s2178_s27 + $0xb8] sm:$0xff] %vm1304_vm1, %v1261_v63 }
 0x2fd   : > { %1327 = vst.msk [vmem:[%s2178_s27 + $0xb0] sm:$0xff] %vm1304_vm1, %v1256_v1 }
 0x301   : > { %v1556_v2 = vpop.f32.mrb[88].mxu0 }
 0x302   : > { %v1271_v3 = vadd.f32 %v1556_v2, %v2171_v19  ;;  %v1265_v4 = vpop.f32.mrb[89].mxu0 }
 0x303   : > { %v1266_v5 = vadd.f32 %v2171_v19, %v1265_v4 }
 0x304   : > { %1330 = vst.msk [vmem:[%s2178_s27 + $0xc8] sm:$0xff] %vm1304_vm1, %v1271_v3 }
 0x305   : > { %1329 = vst.msk [vmem:[%s2178_s27 + $0xc0] sm:$0xff] %vm1304_vm1, %v1266_v5 }
 0x309   : > { %v1559_v6 = vpop.f32.mrb[90].mxu0 }
 0x30a   : > { %v1281_v8 = vadd.f32 %v1559_v6, %v2171_v19  ;;  %v1275_v9 = vpop.f32.mrb[91].mxu0 }
 0x30b   : > { %v1276_v10 = vadd.f32 %v2171_v19, %v1275_v9 }
 0x30c   : > { %1332 = vst.msk [vmem:[%s2178_s27 + $0xd8] sm:$0xff] %vm1304_vm1, %v1281_v8 }
 0x30d   : > { %1331 = vst.msk [vmem:[%s2178_s27 + $0xd0] sm:$0xff] %vm1304_vm1, %v1276_v10 }
 0x311   : > { %v1562_v11 = vpop.f32.mrb[64].mxu1 }
 0x312   : > { %v1291_v12 = vadd.f32 %v1562_v11, %v2171_v19  ;;  %v1285_v13 = vpop.f32.mrb[65].mxu1 }
 0x313   : > { %v1286_v14 = vadd.f32 %v2171_v19, %v1285_v13 }
 0x314   : > { %1334 = vst.msk [vmem:[%s2178_s27 + $0xe8] sm:$0xff] %vm1304_vm1, %v1291_v12 }
 0x315   : > { %1333 = vst.msk [vmem:[%s2178_s27 + $0xe0] sm:$0xff] %vm1304_vm1, %v1286_v14 }
 0x319   : > { %v1565_v15 = vpop.f32.mrb[66].mxu1 }
 0x31a   : > { %v1301_v17 = vadd.f32 %v1565_v15, %v2171_v19  ;;  %v1295_v18 = vpop.f32.mrb[67].mxu1 }
 0x31b   : > { %v1296_v16 = vadd.f32 %v2171_v19, %v1295_v18 }
 0x31c   : > { %1336 = vst.msk [vmem:[%s2178_s27 + $0xf8] sm:$0xff] %vm1304_vm1, %v1301_v17 }
 0x31d   : > { %1335 = vst.msk [vmem:[%s2178_s27 + $0xf0] sm:$0xff] %vm1304_vm1, %v1296_v16 }
 0x31e PF: > { %s17_s24 = sadd.s32 1, %s1694_s24  }
 0x31f   : > { %p14_p4 = scmp.ge.s32.totalorder %s17_s24, 4  }
 0x321   :  { %16 = sbr.rel (!%p14_p4) target bundleno = 1 (0x1), region = 78 }

</bundles_post_ra>
